<compile_context>
chip_gen: v7x
topology: tpu7x:2x2x1
jax: 0.10.0
libtpu: 0.0.40
codegen_flags: <defaults>
</compile_context>

<pallas_src>
import numpy as np
import jax
import jax.numpy as jnp
from jax.experimental import pallas as pl
from jax.experimental.pallas import tpu as pltpu


_LANE = 128
_MAX_TILE_N = 32 * 1024   # lanes per grid step; (Q+1)*TN*4B*2buf << VMEM on all gens


def _round_up(x, m):
    return ((x + m - 1) // m) * m


def _pinball_kernel(q_ref, obs_ref, mod_ref, out_ref, acc_ref):
    """q_ref:(Q,1)  obs_ref:(1,TN)  mod_ref:(Q,TN)  out_ref:(1,1)  acc_ref:(Q,1)."""
    n = pl.program_id(0)

    @pl.when(n == 0)
    def _():
        acc_ref[...] = jnp.zeros_like(acc_ref)

    # (1, TN) sublane-broadcast against (Q, TN): full-vreg VPU work, lane-dense.
    diff = obs_ref[...] - mod_ref[...]
    # nansum semantics: NaN elements (including NaN padding) contribute 0.
    diff = jnp.where(diff != diff, jnp.float32(0), diff)
    # Per-quantile partial sums for this tile, accumulated across grid steps.
    acc_ref[...] += jnp.sum(diff, axis=1, keepdims=True)          # (Q, 1)

    @pl.when(n == pl.num_programs(0) - 1)
    def _():
        s = acc_ref[...]                                          # (Q, 1)
        q = q_ref[...]                                            # (Q, 1)
        per_q = jnp.maximum(q * s, (q - 1.0) * s)                 # (Q, 1)
        # nanmean of a scalar is the identity (nansum never yields NaN).
        out_ref[...] = jnp.sum(per_q, axis=0, keepdims=True)      # (1, 1)


def sum_pinball_loss(observed, modeled, quantiles=(0.1, 0.5, 0.9)):
    """JAX/Pallas equivalent of SumPinballLoss().forward(observed, modeled)."""
    quantiles = tuple(float(q) for q in quantiles)
    Q = len(quantiles)
    assert modeled.shape[-1] >= Q, "modeled last dim must hold the quantiles"

    obs = jnp.squeeze(observed).astype(jnp.float32)
    mod = modeled[..., :Q].astype(jnp.float32)

    # Broadcast exactly like `observed - modeled[..., i]` in torch.
    bshape = jnp.broadcast_shapes(obs.shape, mod.shape[:-1])
    N = int(np.prod(bshape)) if len(bshape) else 1
    obs_flat = jnp.broadcast_to(obs, bshape).reshape(1, N)
    mod_flat = jnp.broadcast_to(mod, bshape + (Q,)).reshape(N, Q)
    mod_t = mod_flat.T                                            # (Q, N): lanes = N

    # Tile the flattened element axis; pad with NaN (== masked to 0 by nansum).
    tn = min(_round_up(max(N, 1), _LANE), _MAX_TILE_N)
    n_pad = _round_up(max(N, 1), tn)
    grid_n = n_pad // tn
    pad = n_pad - N
    if pad:
        obs_flat = jnp.pad(obs_flat, ((0, 0), (0, pad)), constant_values=np.nan)
        mod_t = jnp.pad(mod_t, ((0, 0), (0, pad)), constant_values=np.nan)

    q_arr = jnp.asarray(quantiles, dtype=jnp.float32).reshape(Q, 1)

    out = pl.pallas_call(
        _pinball_kernel,
        out_shape=jax.ShapeDtypeStruct((1, 1), jnp.float32),
        grid_spec=pltpu.PrefetchScalarGridSpec(
            num_scalar_prefetch=0,
            grid=(grid_n,),
            in_specs=[
                pl.BlockSpec((Q, 1), lambda n: (0, 0)),    # quantiles (resident)
                pl.BlockSpec((1, tn), lambda n: (0, n)),   # observed tile
                pl.BlockSpec((Q, tn), lambda n: (0, n)),   # modeled tile (Q x lanes)
            ],
            out_specs=pl.BlockSpec((1, 1), lambda n: (0, 0)),
            scratch_shapes=[pltpu.VMEM((Q, 1), jnp.float32)],     # per-quantile acc
        ),
        compiler_params=pltpu.CompilerParams(
            dimension_semantics=("arbitrary",)),                  # running sum over tiles
    )(q_arr, obs_flat, mod_t)
    return out[0, 0]


# ---------------------------------------------------------------------------
# Pure-JAX reference (mirrors the torch module for the correctness check)
# ---------------------------------------------------------------------------
def ref_sum_pinball_loss(observed, modeled, quantiles=(0.1, 0.5, 0.9)):
    obs = jnp.squeeze(observed).astype(jnp.float32)
    total = jnp.float32(0)
    for i, q in enumerate(quantiles):
        d = obs - modeled[..., i].astype(jnp.float32)
        s = jnp.nansum(d)
        total = total + jnp.maximum(q * s, (q - 1.0) * s)   # nanmean(scalar) == scalar
    return total


# ---------------------------------------------------------------------------
if __name__ == "__main__":
    B, T, Q = 2, 16, 3
    quantiles = (0.1, 0.5, 0.9)

    key = jax.random.PRNGKey(0)
    k1, k2, k3, k4 = jax.random.split(key, 4)

    observed = jax.random.normal(k1, (B, T, 1), jnp.float32)
    modeled = jax.random.normal(k2, (B, T, Q), jnp.float32)

    # Sprinkle NaNs into both inputs to exercise the nansum path.
    observed = jnp.where(jax.random.bernoulli(k3, 0.1, (B, T, 1)), jnp.nan, observed)
    modeled = jnp.where(jax.random.bernoulli(k4, 0.1, (B, T, Q)), jnp.nan, modeled)

    loss = jax.block_until_ready(sum_pinball_loss(observed, modeled, quantiles))
    expected = jax.block_until_ready(ref_sum_pinball_loss(observed, modeled, quantiles))

    assert np.isfinite(np.asarray(loss)), loss
    assert np.allclose(np.asarray(loss), np.asarray(expected), rtol=1e-5, atol=1e-5), (
        float(loss), float(expected))
    print("KERNEL_OK")
</pallas_src>

<mosaic_0001>
module attributes {stable_mosaic.version = 11 : i64} {
  func.func @_pinball_kernel(%arg0: i32, %arg1: memref<3x1xf32, #tpu.memory_space<vmem>>, %arg2: memref<1x128xf32, #tpu.memory_space<vmem>>, %arg3: memref<3x128xf32, #tpu.memory_space<vmem>>, %arg4: memref<1x1xf32, #tpu.memory_space<vmem>>, %arg5: memref<3x1xf32, #tpu.memory_space<vmem>>) attributes {dimension_semantics = [#tpu.dimension_semantics<arbitrary>], iteration_bounds = array<i64: 1>, scalar_prefetch = 0 : i64, scratch_operands = 1 : i64, tpu.core_type = #tpu.core_type<tc>, window_params = [{pipeline_mode = #tpu.pipeline_mode<synchronous>, transform_indices = @transform_0, window_bounds = array<i64: 3, 1>}, {transform_indices = @transform_1, window_bounds = array<i64: 1, 128>}, {transform_indices = @transform_2, window_bounds = array<i64: 3, 128>}, {pipeline_mode = #tpu.pipeline_mode<synchronous>, transform_indices = @transform_3, window_bounds = array<i64: 1, 1>}]} {
    %c0_i32 = arith.constant 0 : i32
    %0 = arith.cmpi eq, %arg0, %c0_i32 : i32
    %1 = arith.extui %0 : i1 to i32
    %c0_i32_0 = arith.constant 0 : i32
    %2 = arith.cmpi ne, %1, %c0_i32_0 : i32
    scf.if %2 {
      %cst_11 = arith.constant 0.000000e+00 : f32
      %18 = vector.broadcast %cst_11 : f32 to vector<3x1xf32>
      %c0_12 = arith.constant 0 : index
      %c0_13 = arith.constant 0 : index
      %19 = vector.load %arg5[%c0_12, %c0_13] : memref<3x1xf32, #tpu.memory_space<vmem>>, vector<3x1xf32>
      tpu.vector_store %arg5[%c0_12, %c0_13], %18 {strides = array<i32>} : memref<3x1xf32, #tpu.memory_space<vmem>>, vector<3x1xf32>,
    } else {
    }
    %c0 = arith.constant 0 : index
    %c0_1 = arith.constant 0 : index
    %3 = vector.load %arg2[%c0, %c0_1] : memref<1x128xf32, #tpu.memory_space<vmem>>, vector<1x128xf32>
    %c0_2 = arith.constant 0 : index
    %c0_3 = arith.constant 0 : index
    %4 = vector.load %arg3[%c0_2, %c0_3] : memref<3x128xf32, #tpu.memory_space<vmem>>, vector<3x128xf32>
    %5 = vector.broadcast %3 : vector<1x128xf32> to vector<3x128xf32>
    %6 = arith.subf %5, %4 : vector<3x128xf32>
    %7 = arith.cmpf one, %6, %6 : vector<3x128xf32>
    %cst = arith.constant 0.000000e+00 : f32
    %8 = vector.broadcast %cst : f32 to vector<3x128xf32>
    %9 = arith.select %7, %8, %6 : vector<3x128xi1>, vector<3x128xf32>
    %c0_4 = arith.constant 0 : index
    %c0_5 = arith.constant 0 : index
    %10 = vector.load %arg5[%c0_4, %c0_5] : memref<3x1xf32, #tpu.memory_space<vmem>>, vector<3x1xf32>
    %cst_6 = arith.constant dense<0.000000e+00> : vector<3xf32>
    %11 = vector.multi_reduction <add>, %9, %cst_6 [1] : vector<3x128xf32> to vector<3xf32>
    %12 = vector.shape_cast %11 : vector<3xf32> to vector<3x1xf32>
    %13 = arith.addf %10, %12 : vector<3x1xf32>
    %c0_7 = arith.constant 0 : index
    %c0_8 = arith.constant 0 : index
    %14 = vector.load %arg5[%c0_7, %c0_8] : memref<3x1xf32, #tpu.memory_space<vmem>>, vector<3x1xf32>
    tpu.vector_store %arg5[%c0_7, %c0_8], %13 {strides = array<i32>} : memref<3x1xf32, #tpu.memory_space<vmem>>, vector<3x1xf32>,
    %c0_i32_9 = arith.constant 0 : i32
    %15 = arith.cmpi eq, %arg0, %c0_i32_9 : i32
    %16 = arith.extui %15 : i1 to i32
    %c0_i32_10 = arith.constant 0 : i32
    %17 = arith.cmpi ne, %16, %c0_i32_10 : i32
    scf.if %17 {
      %c0_11 = arith.constant 0 : index
      %c0_12 = arith.constant 0 : index
      %18 = vector.load %arg5[%c0_11, %c0_12] : memref<3x1xf32, #tpu.memory_space<vmem>>, vector<3x1xf32>
      %c0_13 = arith.constant 0 : index
      %c0_14 = arith.constant 0 : index
      %19 = vector.load %arg1[%c0_13, %c0_14] : memref<3x1xf32, #tpu.memory_space<vmem>>, vector<3x1xf32>
      %20 = arith.mulf %19, %18 : vector<3x1xf32>
      %cst_15 = arith.constant 1.000000e+00 : f32
      %21 = vector.broadcast %cst_15 : f32 to vector<3x1xf32>
      %22 = arith.subf %19, %21 : vector<3x1xf32>
      %23 = arith.mulf %22, %18 : vector<3x1xf32>
      %24 = arith.maximumf %20, %23 : vector<3x1xf32>
      %cst_16 = arith.constant dense<0.000000e+00> : vector<1xf32>
      %25 = vector.multi_reduction <add>, %24, %cst_16 [0] : vector<3x1xf32> to vector<1xf32>
      %26 = vector.shape_cast %25 : vector<1xf32> to vector<1x1xf32>
      %c0_17 = arith.constant 0 : index
      %c0_18 = arith.constant 0 : index
      %27 = vector.load %arg4[%c0_17, %c0_18] : memref<1x1xf32, #tpu.memory_space<vmem>>, vector<1x1xf32>
      tpu.vector_store %arg4[%c0_17, %c0_18], %26 {strides = array<i32>} : memref<1x1xf32, #tpu.memory_space<vmem>>, vector<1x1xf32>,
    } else {
    }
    return
  }
  func.func @transform_0(%arg0: i32) -> (i32, i32) {
    %c0_i32 = arith.constant 0 : i32
    %c0_i32_0 = arith.constant 0 : i32
    %c0_i32_1 = arith.constant 0 : i32
    return %c0_i32, %c0_i32_0 : i32, i32
  }
  func.func @transform_1(%arg0: i32) -> (i32, i32) {
    %c0_i32 = arith.constant 0 : i32
    %c0_i32_0 = arith.constant 0 : i32
    return %c0_i32, %arg0 : i32, i32
  }
  func.func @transform_2(%arg0: i32) -> (i32, i32) {
    %c0_i32 = arith.constant 0 : i32
    %c0_i32_0 = arith.constant 0 : i32
    return %c0_i32, %arg0 : i32, i32
  }
  func.func @transform_3(%arg0: i32) -> (i32, i32) {
    %c0_i32 = arith.constant 0 : i32
    %c0_i32_0 = arith.constant 0 : i32
    %c0_i32_1 = arith.constant 0 : i32
    return %c0_i32, %c0_i32_0 : i32, i32
  }
}

</mosaic_0001>

<bundles_post_ra>
// kernel: tpu_custom_call.1
= control target key start
LH: loop header
LB: loop body
LE: loop exit
PB: predicated region body
PF: predicated region fallthrough
CT: control target
= control target key end

     0   :  { %vm19_vm0 = vcmask 2048   ;;  %s146_s0 = inlined_call_operand.vmem [shape: f32[3,1], index: 0, kind: input, shape index: {}]   ;;  %s147_s1 = inlined_call_operand.vmem [shape: f32[1,128], index: 1, kind: input, shape index: {}]   ;;  %s148_s2 = inlined_call_operand.vmem [shape: f32[3,128], index: 2, kind: input, shape index: {}]   ;;  %s149_s3 = inlined_call_operand.hbm [shape: f32[1,1], index: 3, kind: output, shape index: {}]  }
   0x1   :  { %v72_v0 = vld [vmem:[%s147_s1] ss:$0 sm:$0xff] }
   0x2   :  { %v22_v1 = vld [vmem:[%s148_s2] sm:$0x7] }
   0x3   :  { %v29_v2 = vsub.f32 %v72_v0, %v22_v1 }
   0x4   :  { %8 = vsyncpa [#allocation4], 0  ;;  %vm33_vm1 = vcmask 1042432   ;;  %v100_v3 = vmov 0.0   ;;  %v44_v9 = vld [vmem:[%s146_s0] sm:$0x7] }
   0x5   :  { %20 = vst.msk [vmem:[#allocation2] sm:$0x7] %vm19_vm0, %v100_v3  ;;  %vm30_vm2 = vcmp.ne.f32.partialorder %v29_v2, %v29_v2  ;;  %v73_v10 = vadd.f32 -1.0, %v44_v9  ;;  %s101_s2 = smov [#allocation3]   ;;  %vm56_vm3 = vcmask 0  }
   0x6   :  { %v31_v4 = vsel %vm30_vm2, 0.0, %v29_v2  ;;  %s64_s17 = sshll.u32 %s101_s2, 4  ;;  %s65_s17 = int_to_ptr.vmem [resolvable:$true] %s64_s17 }
   0x7   :  { %v34_v5 = vsel %vm33_vm1, %v31_v4, 0.0  ;;  %s76_s18 = scalar_lea.vmem %s65_s17, 16  ;;  %s80_s0 = scalar_lea.vmem %s65_s17, 32 }
   0x8   :  { %35 = vadd.xlane.f32.xlu0 %v34_v5  ;;  %p77_p0 = scmp.ne.s32.totalorder %s65_s17, %s76_s18  ;;  %p81_p1 = scmp.lt.s32.totalorder %s65_s17, %s65_s17 }
   0x9   :  { %p82_p2 = scmp.lt.s32.totalorder %s80_s0, %s76_s18 }
   0xb   :  { %p83_p3 = por %p82_p2, %p81_p1 }
   0xc   :  { %v32_v6 = vld [vmem:[#allocation2] sm:$0x7] }
   0xd   :  { %p84_p4 = pnand %p83_p3, %p77_p0 }
  0x95   :  { %v36_v7 = vpop.xlane.xlu0 %35 }
  0x96   :  { %v37_v8 = vadd.f32 %v36_v7, %v32_v6 }
  0x98   :  { %39 = vst.msk [vmem:[#allocation2] sm:$0x7] %vm19_vm0, %v37_v8 }
  0x9f   :  { %v43_v11 = vld [vmem:[#allocation2] sm:$0x7] }
  0xa0   :  { %v45_v12 = vmul.f32 %v44_v9, %v43_v11  ;;  %v47_v13 = vmul.f32 %v73_v10, %v43_v11 }
  0xa2   :  { %v48_v14 = vmax.f32 %v45_v12, %v47_v13 }
  0xa4   :  { %v49_v15 = vsel %vm19_vm0, %v48_v14, 0.0 }
  0xa5   :  { %v50_v16 = vrot.slane %v49_v15, 4 }
  0xa7   :  { %v51_v17 = vadd.f32 %v50_v16, %v49_v15 }
  0xa9   :  { %v52_v18 = vrot.slane %v51_v17, 2 }
  0xab   :  { %v53_v19 = vadd.f32 %v52_v18, %v51_v17 }
  0xad   :  { %v54_v20 = vrot.slane %v53_v19, 1 }
  0xaf   :  { %v55_v21 = vadd.f32 %v54_v20, %v53_v19 }
  0xb1   :  { %57 = vst.msk [vmem:[#allocation3] sm:$0x1] %vm56_vm3, %v55_v21 }
  0xb2   :  { %87 = shalt.err (!%p84_p4)
}
  0xb3   :  { %s88_s21 = scalar_lea.hbm %s149_s3, 16 }
  0xb4   :  { %p89_p5 = scmp.ne.s32.totalorder %s149_s3, %s88_s21  ;;  %p92_p6 = scmp.lt.u32.totalorder %s88_s21, %s149_s3 }
  0xb6   :  { %p94_p7 = pnand %p92_p6, %p89_p5 }
  0xb8   :  { %97 = shalt.err (!%p94_p7)
}
  0xb9   :  { %67 = dma.vmem_to_hbm [thread:$0]  %s65_s17, 16, %s149_s3, [#allocation4]  }
  0xba   :  { %98 = dma.done.wait [#allocation4], 16  }
  0xbb   :  { %99 = vsyncadd [#allocation4], 4294967280 }
  0xbc   :  { %71 = vsyncpa [#allocation4], 1 }

</bundles_post_ra>
